<compile_context>
chip_gen: v7x
topology: tpu7x:2x2x1
jax: 0.10.0
libtpu: 0.0.40
codegen_flags: <defaults>
</compile_context>

<pallas_src>
import functools

import jax
import jax.numpy as jnp
from jax import lax
from jax.experimental import pallas as pl
from jax.experimental.pallas import tpu as pltpu

HIDDEN = 32
LANE = 128     # elements per lane-row
B = 8          # lane-rows (x128 elements) per block-diagonal matmul chunk
TILE_R = 2048  # lane-rows per grid step -> 1 MiB per in/out block


def _mlp_kernel(x_ref, w1_ref, b1_ref, w2_ref, b2_ref, w3_ref, b3_ref, o_ref):
    # x_ref / o_ref: (tile_r, LANE) f32.
    # Block-diagonal constants (hidden dim on sublanes, B diagonal blocks):
    #   w1 (B*H, B), b1 (B*H, 1), w2 (B*H, B*H), b2 (B*H, 1), w3 (B, B*H), b3 (1,1)
    w1 = w1_ref[...]
    b1 = b1_ref[...]
    w2 = w2_ref[...]
    b2 = b2_ref[...]
    w3 = w3_ref[...]
    b3 = b3_ref[...]
    n_chunks = x_ref.shape[0] // B

    def body(c, carry):
        r = pl.multiple_of(c * B, B)
        x = x_ref[pl.ds(r, B), :]                                  # (B, LANE): 1 full vreg load
        # fc1: (B*H, B) @ (B, LANE) -> (B*H, LANE)   [MXU]
        h = jnp.dot(w1, x, preferred_element_type=jnp.float32)
        h = jnp.maximum(h + b1, 0.0)
        # fc2: (B*H, B*H) @ (B*H, LANE) -> (B*H, LANE)   [MXU]
        h = jnp.dot(w2, h, preferred_element_type=jnp.float32)
        h = jnp.maximum(h + b2, 0.0)
        # fc3: (B, B*H) @ (B*H, LANE) -> (B, LANE)   [MXU]
        z = jnp.dot(w3, h, preferred_element_type=jnp.float32) + b3
        # Exact sigmoid (exp on the EUP); lane-dense unmasked (8,128) store.
        o_ref[pl.ds(r, B), :] = (1.0 / (1.0 + jnp.exp(-z))).astype(o_ref.dtype)
        return carry

    lax.fori_loop(0, n_chunks, body, 0, unroll=False)


def binary_mlp_forward(density, params):
    """density: any-shape array. Returns f32 mask of shape (density.size,)."""
    w1, b1, w2, b2, w3, b3 = params
    n = density.size
    flat = density.reshape(-1).astype(jnp.float32)

    # Lane-dense layout: 128 elements per row; rows padded to a tile multiple.
    # Padded tail elements are computed (harmless) and sliced off at the end.
    n_rows = max(1, -(-n // LANE))
    # Prefer >=2 grid steps (v7x has two TensorCores) for mid-size inputs.
    half_rows = -(-n_rows // 2)
    tile_r = min(TILE_R, ((half_rows + B - 1) // B) * B)
    tile_r = max(tile_r, B)
    n_rows_pad = ((n_rows + tile_r - 1) // tile_r) * tile_r
    flat = jnp.pad(flat, (0, n_rows_pad * LANE - n))
    x2d = flat.reshape(n_rows_pad, LANE)

    # Block-diagonal weight expansion (built once per call; loaded once into
    # VMEM as constant-index blocks, no per-step re-DMA).
    eye = jnp.eye(B, dtype=jnp.float32)
    w1bd = jnp.kron(eye, w1)          # (B*H, B)
    b1t = jnp.tile(b1, (B, 1))        # (B*H, 1)
    w2bd = jnp.kron(eye, w2)          # (B*H, B*H)
    b2t = jnp.tile(b2, (B, 1))        # (B*H, 1)
    w3bd = jnp.kron(eye, w3.T)        # (B, B*H)

    grid = (n_rows_pad // tile_r,)
    const = lambda shape: pl.BlockSpec(shape, lambda i: (0, 0))

    out = pl.pallas_call(
        _mlp_kernel,
        out_shape=jax.ShapeDtypeStruct((n_rows_pad, LANE), jnp.float32),
        grid_spec=pltpu.PrefetchScalarGridSpec(
            num_scalar_prefetch=0,
            grid=grid,
            in_specs=[
                pl.BlockSpec((tile_r, LANE), lambda i: (i, 0)),  # density rows
                const((B * HIDDEN, B)),          # fc1 weights, block-diagonal
                const((B * HIDDEN, 1)),          # fc1 bias, tiled
                const((B * HIDDEN, B * HIDDEN)), # fc2 weights, block-diagonal
                const((B * HIDDEN, 1)),          # fc2 bias, tiled
                const((B, B * HIDDEN)),          # fc3 weights, block-diagonal
                const((1, 1)),                   # fc3 bias
            ],
            out_specs=pl.BlockSpec((tile_r, LANE), lambda i: (i, 0)),
        ),
        compiler_params=pltpu.CompilerParams(
            dimension_semantics=("parallel",)),
    )(x2d, w1bd, b1t, w2bd, b2t, w3bd, b3)

    return out.reshape(-1)[:n]   # view(-1)


def init_params(key):
    """torch.nn.Linear-style init, hidden dim on the sublane axis.
    w1 (32,1)=fc1.weight, b1 (32,1), w2 (32,32)=fc2.weight, b2 (32,1),
    w3 (32,1)=fc3.weight.T, b3 (1,1)."""
    k1, k2, k3, k4, k5, k6 = jax.random.split(key, 6)
    s1 = 1.0
    s2 = 1.0 / jnp.sqrt(float(HIDDEN))
    w1 = jax.random.uniform(k1, (HIDDEN, 1), jnp.float32, -s1, s1)
    b1 = jax.random.uniform(k2, (HIDDEN, 1), jnp.float32, -s1, s1)
    w2 = jax.random.uniform(k3, (HIDDEN, HIDDEN), jnp.float32, -s2, s2)
    b2 = jax.random.uniform(k4, (HIDDEN, 1), jnp.float32, -s2, s2)
    w3 = jax.random.uniform(k5, (HIDDEN, 1), jnp.float32, -s2, s2)
    b3 = jax.random.uniform(k6, (1, 1), jnp.float32, -s2, s2)
    return (w1, b1, w2, b2, w3, b3)


def _reference(density, params):
    w1, b1, w2, b2, w3, b3 = params
    x = density.reshape(-1, 1).astype(jnp.float32)                    # (N, 1)
    h = jnp.maximum(x * w1[:, 0] + b1[:, 0], 0.0)                     # fc1 -> (N, 32)
    h = jnp.maximum(jnp.dot(h, w2.T) + b2[:, 0], 0.0)                 # fc2 -> (N, 32)
    z = jnp.sum(h * w3[:, 0], axis=-1, keepdims=True) + b3[0, 0]      # fc3 -> (N, 1)
    return (1.0 / (1.0 + jnp.exp(-z))).reshape(-1)


if __name__ == "__main__":
    key = jax.random.PRNGKey(0)
    kp, kd = jax.random.split(key)
    params = init_params(kp)
    fwd = jax.jit(functools.partial(binary_mlp_forward, params=params))

    # Primary small input (per-sample scalar densities over a grid of points).
    density = jax.random.uniform(kd, (2, 16, 16), jnp.float32)
    mask = jax.block_until_ready(fwd(density))
    ref = _reference(density, params)
    assert mask.shape == (density.size,)
    assert jnp.allclose(mask, ref, atol=1e-5, rtol=1e-5), (
        float(jnp.max(jnp.abs(mask - ref))))

    # Secondary check exercising the multi-step (grid >= 2) path + padding.
    density2 = jax.random.uniform(kd, (2, 4, 16, 15), jnp.float32)
    mask2 = jax.block_until_ready(fwd(density2))
    ref2 = _reference(density2, params)
    assert mask2.shape == (density2.size,)
    assert jnp.allclose(mask2, ref2, atol=1e-5, rtol=1e-5), (
        float(jnp.max(jnp.abs(mask2 - ref2))))

    print("KERNEL_OK")
</pallas_src>

<mosaic_0001>
module attributes {stable_mosaic.version = 11 : i64} {
  func.func @_mlp_kernel(%arg0: i32, %arg1: memref<8x128xf32, #tpu.memory_space<vmem>>, %arg2: memref<256x8xf32, #tpu.memory_space<vmem>>, %arg3: memref<256x1xf32, #tpu.memory_space<vmem>>, %arg4: memref<256x256xf32, #tpu.memory_space<vmem>>, %arg5: memref<256x1xf32, #tpu.memory_space<vmem>>, %arg6: memref<8x256xf32, #tpu.memory_space<vmem>>, %arg7: memref<1x1xf32, #tpu.memory_space<vmem>>, %arg8: memref<8x128xf32, #tpu.memory_space<vmem>>) attributes {dimension_semantics = [#tpu.dimension_semantics<parallel>], iteration_bounds = array<i64: 1>, scalar_prefetch = 0 : i64, scratch_operands = 0 : i64, tpu.core_type = #tpu.core_type<tc>, window_params = [{transform_indices = @transform_0, window_bounds = array<i64: 8, 128>}, {pipeline_mode = #tpu.pipeline_mode<synchronous>, transform_indices = @transform_1, window_bounds = array<i64: 256, 8>}, {pipeline_mode = #tpu.pipeline_mode<synchronous>, transform_indices = @transform_2, window_bounds = array<i64: 256, 1>}, {pipeline_mode = #tpu.pipeline_mode<synchronous>, transform_indices = @transform_3, window_bounds = array<i64: 256, 256>}, {pipeline_mode = #tpu.pipeline_mode<synchronous>, transform_indices = @transform_4, window_bounds = array<i64: 256, 1>}, {pipeline_mode = #tpu.pipeline_mode<synchronous>, transform_indices = @transform_5, window_bounds = array<i64: 8, 256>}, {pipeline_mode = #tpu.pipeline_mode<synchronous>, transform_indices = @transform_6, window_bounds = array<i64: 1, 1>}, {transform_indices = @transform_7, window_bounds = array<i64: 8, 128>}]} {
    %c0 = arith.constant 0 : index
    %c0_0 = arith.constant 0 : index
    %0 = vector.load %arg2[%c0, %c0_0] : memref<256x8xf32, #tpu.memory_space<vmem>>, vector<256x8xf32>
    %c0_1 = arith.constant 0 : index
    %c0_2 = arith.constant 0 : index
    %1 = vector.load %arg3[%c0_1, %c0_2] : memref<256x1xf32, #tpu.memory_space<vmem>>, vector<256x1xf32>
    %c0_3 = arith.constant 0 : index
    %c0_4 = arith.constant 0 : index
    %2 = vector.load %arg4[%c0_3, %c0_4] : memref<256x256xf32, #tpu.memory_space<vmem>>, vector<256x256xf32>
    %c0_5 = arith.constant 0 : index
    %c0_6 = arith.constant 0 : index
    %3 = vector.load %arg5[%c0_5, %c0_6] : memref<256x1xf32, #tpu.memory_space<vmem>>, vector<256x1xf32>
    %c0_7 = arith.constant 0 : index
    %c0_8 = arith.constant 0 : index
    %4 = vector.load %arg6[%c0_7, %c0_8] : memref<8x256xf32, #tpu.memory_space<vmem>>, vector<8x256xf32>
    %c0_9 = arith.constant 0 : index
    %c0_10 = arith.constant 0 : index
    %5 = vector.load %arg7[%c0_9, %c0_10] : memref<1x1xf32, #tpu.memory_space<vmem>>, vector<1x1xf32>
    %c0_i32 = arith.constant 0 : i32
    %c8_i32 = arith.constant 8 : i32
    %6 = arith.muli %c0_i32, %c8_i32 : i32
    %7 = tpu.assume_multiple %6, 8 : i32
    %8 = arith.index_cast %7 : i32 to index
    %c0_11 = arith.constant 0 : index
    %9 = vector.load %arg1[%8, %c0_11] : memref<8x128xf32, #tpu.memory_space<vmem>>, vector<8x128xf32>
    %cst = arith.constant dense<0.000000e+00> : vector<256x128xf32>
    %10 = tpu.matmul %0, %9, %cst {dimension_numbers = #tpu.dot_dimension_numbers<[1], [0], [0], [1], [0, 0, 1, 1], [], []>} : vector<256x8xf32>, vector<8x128xf32>, vector<256x128xf32> -> vector<256x128xf32>
    %11 = vector.broadcast %1 : vector<256x1xf32> to vector<256x128xf32>
    %12 = arith.addf %10, %11 : vector<256x128xf32>
    %cst_12 = arith.constant 0.000000e+00 : f32
    %13 = vector.broadcast %cst_12 : f32 to vector<256x128xf32>
    %14 = arith.maximumf %12, %13 : vector<256x128xf32>
    %cst_13 = arith.constant dense<0.000000e+00> : vector<256x128xf32>
    %15 = tpu.matmul %2, %14, %cst_13 {dimension_numbers = #tpu.dot_dimension_numbers<[1], [0], [0], [1], [0, 0, 1, 1], [], []>} : vector<256x256xf32>, vector<256x128xf32>, vector<256x128xf32> -> vector<256x128xf32>
    %16 = vector.broadcast %3 : vector<256x1xf32> to vector<256x128xf32>
    %17 = arith.addf %15, %16 : vector<256x128xf32>
    %cst_14 = arith.constant 0.000000e+00 : f32
    %18 = vector.broadcast %cst_14 : f32 to vector<256x128xf32>
    %19 = arith.maximumf %17, %18 : vector<256x128xf32>
    %cst_15 = arith.constant dense<0.000000e+00> : vector<8x128xf32>
    %20 = tpu.matmul %4, %19, %cst_15 {dimension_numbers = #tpu.dot_dimension_numbers<[1], [0], [0], [1], [0, 0, 1, 1], [], []>} : vector<8x256xf32>, vector<256x128xf32>, vector<8x128xf32> -> vector<8x128xf32>
    %21 = vector.broadcast %5 : vector<1x1xf32> to vector<8x128xf32>
    %22 = arith.addf %20, %21 : vector<8x128xf32>
    %cst_16 = arith.constant 0.000000e+00 : f32
    %23 = vector.broadcast %cst_16 : f32 to vector<8x128xf32>
    %24 = arith.subf %23, %22 : vector<8x128xf32>
    %25 = math.exp %24 : vector<8x128xf32>
    %cst_17 = arith.constant 1.000000e+00 : f32
    %26 = vector.broadcast %cst_17 : f32 to vector<8x128xf32>
    %27 = arith.addf %26, %25 : vector<8x128xf32>
    %cst_18 = arith.constant 1.000000e+00 : f32
    %28 = vector.broadcast %cst_18 : f32 to vector<8x128xf32>
    %29 = arith.divf %28, %27 : vector<8x128xf32>
    %30 = arith.index_cast %7 : i32 to index
    %c0_19 = arith.constant 0 : index
    %31 = vector.load %arg8[%30, %c0_19] : memref<8x128xf32, #tpu.memory_space<vmem>>, vector<8x128xf32>
    tpu.vector_store %arg8[%30, %c0_19], %29 {strides = array<i32>} : memref<8x128xf32, #tpu.memory_space<vmem>>, vector<8x128xf32>,
    %c1_i32 = arith.constant 1 : i32
    return
  }
  func.func @transform_0(%arg0: i32) -> (i32, i32) {
    %c0_i32 = arith.constant 0 : i32
    %c0_i32_0 = arith.constant 0 : i32
    return %arg0, %c0_i32 : i32, i32
  }
  func.func @transform_1(%arg0: i32) -> (i32, i32) {
    %c0_i32 = arith.constant 0 : i32
    %c0_i32_0 = arith.constant 0 : i32
    %c0_i32_1 = arith.constant 0 : i32
    return %c0_i32, %c0_i32_0 : i32, i32
  }
  func.func @transform_2(%arg0: i32) -> (i32, i32) {
    %c0_i32 = arith.constant 0 : i32
    %c0_i32_0 = arith.constant 0 : i32
    %c0_i32_1 = arith.constant 0 : i32
    return %c0_i32, %c0_i32_0 : i32, i32
  }
  func.func @transform_3(%arg0: i32) -> (i32, i32) {
    %c0_i32 = arith.constant 0 : i32
    %c0_i32_0 = arith.constant 0 : i32
    %c0_i32_1 = arith.constant 0 : i32
    return %c0_i32, %c0_i32_0 : i32, i32
  }
  func.func @transform_4(%arg0: i32) -> (i32, i32) {
    %c0_i32 = arith.constant 0 : i32
    %c0_i32_0 = arith.constant 0 : i32
    %c0_i32_1 = arith.constant 0 : i32
    return %c0_i32, %c0_i32_0 : i32, i32
  }
  func.func @transform_5(%arg0: i32) -> (i32, i32) {
    %c0_i32 = arith.constant 0 : i32
    %c0_i32_0 = arith.constant 0 : i32
    %c0_i32_1 = arith.constant 0 : i32
    return %c0_i32, %c0_i32_0 : i32, i32
  }
  func.func @transform_6(%arg0: i32) -> (i32, i32) {
    %c0_i32 = arith.constant 0 : i32
    %c0_i32_0 = arith.constant 0 : i32
    %c0_i32_1 = arith.constant 0 : i32
    return %c0_i32, %c0_i32_0 : i32, i32
  }
  func.func @transform_7(%arg0: i32) -> (i32, i32) {
    %c0_i32 = arith.constant 0 : i32
    %c0_i32_0 = arith.constant 0 : i32
    return %arg0, %c0_i32 : i32, i32
  }
}

</mosaic_0001>

<bundles_post_ra>
// kernel: binary_mlp_forward.1
= control target key start
LH: loop header
LB: loop body
LE: loop exit
PB: predicated region body
PF: predicated region fallthrough
CT: control target
= control target key end

     0   :  { %vm352_vm0 = vcmask 64512   ;;  %v1484_v0 = vmov 0   ;;  %s2133_s2 = inlined_call_operand.vmem [shape: f32[256,1], index: 2, kind: input, shape index: {}]   ;;  %s2134_s0 = inlined_call_operand.vmem [shape: f32[8,128], index: 0, kind: input, shape index: {}]   ;;  %s2135_s1 = inlined_call_operand.vmem [shape: f32[256,8], index: 1, kind: input, shape index: {}]   ;;  %s2136_s6 = inlined_call_operand.<no memory space> [shape: f32[1,1], index: 6, kind: input, shape index: {}]   ;;  %s2137_s4 = inlined_call_operand.vmem [shape: f32[256,1], index: 4, kind: input, shape index: {}]   ;;  %s2138_s3 = inlined_call_operand.vmem [shape: f32[256,256], index: 3, kind: input, shape index: {}]   ;;  %s2139_s5 = inlined_call_operand.vmem [shape: f32[8,256], index: 5, kind: input, shape index: {}]   ;;  %s2140_s7 = inlined_call_operand.vmem [shape: f32[8,128], index: 7, kind: output, shape index: {}]  }
   0x1   :  { %1479 = vset.pattern.permute.xlu1 %v1484_v0  ;;  %1478 = vset.pattern.permute.xlu0 %v1484_v0  ;;  %v62_v1 = vld [vmem:[%s2133_s2 + $0x10] sm:$0xff]  ;;  %v60_v2 = vld [vmem:[%s2133_s2] sm:$0xff]  ;;  %v12_v4 = vstv %s2136_s6  ;;  %v29_v6 = vld [vmem:[%s2135_s1 + $0x8] sm:$0xff] }
   0x2   :  { %v191_v3 = vld [vmem:[%s2134_s0] sm:$0xff]  ;;  %204 = vperm.xlu1 %1479, %v62_v1   ;;  %194 = vperm.xlu0 %1478, %v60_v2   ;;  %13 = vst [vmem:[#allocation2] sm:$0x1] %v12_v4  ;;  %v63_v7 = vld [vmem:[%s2133_s2 + $0x18] sm:$0xff]  ;;  %v61_v8 = vld [vmem:[%s2133_s2 + $0x8] sm:$0xff] }
   0x3   :  { %v28_v5 = vld [vmem:[%s2135_s1] sm:$0xff]  ;;  %1314 = vmatprep.subr.mxu0 %v191_v3  ;;  %v30_v9 = vld [vmem:[%s2135_s1 + $0x10] sm:$0xff]  ;;  %v31_v10 = vld [vmem:[%s2135_s1 + $0x18] sm:$0xff] }
   0x4   :  { %1316 = vmatprep.mubr.msk.f32.mxu0 %vm352_vm0, %v28_v5  ;;  %1315 = vmatpush3.msra.mxu0 %v191_v3  ;;  %v65_v11 = vld [vmem:[%s2133_s2 + $0x28] sm:$0xff]  ;;  %v64_v12 = vld [vmem:[%s2133_s2 + $0x20] sm:$0xff]  ;;  %v67_v15 = vld [vmem:[%s2133_s2 + $0x38] sm:$0xff] }
   0x5   :  { %1317 = vmatmul.mubr.msk.f32.vlgmr.msra.gmra.mrb[0].mxu0 %vm352_vm0, %v29_v6  ;;  %v32_v13 = vld [vmem:[%s2135_s1 + $0x20] sm:$0xff]  ;;  %v33_v14 = vld [vmem:[%s2135_s1 + $0x28] sm:$0xff]  ;;  %v66_v16 = vld [vmem:[%s2133_s2 + $0x30] sm:$0xff] }
   0x6   :  { %209 = vperm.xlu1 %1479, %v63_v7   ;;  %199 = vperm.xlu0 %1478, %v61_v8   ;;  %v34_v17 = vld [vmem:[%s2135_s1 + $0x30] sm:$0xff]  ;;  %v35_v18 = vld [vmem:[%s2135_s1 + $0x38] sm:$0xff]  ;;  %v69_v19 = vld [vmem:[%s2133_s2 + $0x48] sm:$0xff] }
   0x7   :  { %1319 = vmatprep.mubr.msk.f32.mxu0 %vm352_vm0, %v30_v9  ;;  %v68_v20 = vld [vmem:[%s2133_s2 + $0x40] sm:$0xff]  ;;  %v37_v22 = vld [vmem:[%s2135_s1 + $0x48] sm:$0xff]  ;;  %v71_v23 = vld [vmem:[%s2133_s2 + $0x58] sm:$0xff] }
   0x8   :  { %v36_v21 = vld [vmem:[%s2135_s1 + $0x40] sm:$0xff]  ;;  %v70_v24 = vld [vmem:[%s2133_s2 + $0x50] sm:$0xff]  ;;  %v39_v26 = vld [vmem:[%s2135_s1 + $0x58] sm:$0xff] }
   0x9   :  { %1320 = vmatmul.mubr.msk.f32.gmra.mrb[2].mxu0 %vm352_vm0, %v31_v10  ;;  %v38_v25 = vld [vmem:[%s2135_s1 + $0x50] sm:$0xff]  ;;  %v73_v27 = vld [vmem:[%s2133_s2 + $0x68] sm:$0xff]  ;;  %v72_v28 = vld [vmem:[%s2133_s2 + $0x60] sm:$0xff] }
   0xa   :  { %219 = vperm.xlu1 %1479, %v65_v11   ;;  %214 = vperm.xlu0 %1478, %v64_v12   ;;  %v40_v29 = vld [vmem:[%s2135_s1 + $0x60] sm:$0xff]  ;;  %v41_v30 = vld [vmem:[%s2135_s1 + $0x68] sm:$0xff]  ;;  %v75_v31 = vld [vmem:[%s2133_s2 + $0x78] sm:$0xff] }
   0xb   :  { %1322 = vmatprep.mubr.msk.f32.mxu0 %vm352_vm0, %v32_v13  ;;  %v74_v32 = vld [vmem:[%s2133_s2 + $0x70] sm:$0xff]  ;;  %v43_v34 = vld [vmem:[%s2135_s1 + $0x78] sm:$0xff]  ;;  %v77_v35 = vld [vmem:[%s2133_s2 + $0x88] sm:$0xff] }
   0xc   :  { %v42_v33 = vld [vmem:[%s2135_s1 + $0x70] sm:$0xff]  ;;  %v76_v36 = vld [vmem:[%s2133_s2 + $0x80] sm:$0xff]  ;;  %v45_v38 = vld [vmem:[%s2135_s1 + $0x88] sm:$0xff] }
   0xd   :  { %1323 = vmatmul.mubr.msk.f32.gmra.mrb[4].mxu0 %vm352_vm0, %v33_v14  ;;  %v44_v37 = vld [vmem:[%s2135_s1 + $0x80] sm:$0xff]  ;;  %v79_v39 = vld [vmem:[%s2133_s2 + $0x98] sm:$0xff]  ;;  %v78_v40 = vld [vmem:[%s2133_s2 + $0x90] sm:$0xff] }
   0xe   :  { %229 = vperm.xlu1 %1479, %v67_v15   ;;  %224 = vperm.xlu0 %1478, %v66_v16   ;;  %v46_v41 = vld [vmem:[%s2135_s1 + $0x90] sm:$0xff]  ;;  %v47_v42 = vld [vmem:[%s2135_s1 + $0x98] sm:$0xff]  ;;  %v81_v43 = vld [vmem:[%s2133_s2 + $0xa8] sm:$0xff] }
   0xf   :  { %1325 = vmatprep.mubr.msk.f32.mxu0 %vm352_vm0, %v34_v17  ;;  %v80_v44 = vld [vmem:[%s2133_s2 + $0xa0] sm:$0xff]  ;;  %v49_v46 = vld [vmem:[%s2135_s1 + $0xa8] sm:$0xff]  ;;  %v83_v47 = vld [vmem:[%s2133_s2 + $0xb8] sm:$0xff] }
  0x10   :  { %v48_v45 = vld [vmem:[%s2135_s1 + $0xa0] sm:$0xff]  ;;  %v82_v48 = vld [vmem:[%s2133_s2 + $0xb0] sm:$0xff]  ;;  %v51_v50 = vld [vmem:[%s2135_s1 + $0xb8] sm:$0xff] }
  0x11   :  { %1326 = vmatmul.mubr.msk.f32.gmra.mrb[6].mxu0 %vm352_vm0, %v35_v18  ;;  %v50_v49 = vld [vmem:[%s2135_s1 + $0xb0] sm:$0xff]  ;;  %v85_v51 = vld [vmem:[%s2133_s2 + $0xc8] sm:$0xff]  ;;  %v84_v52 = vld [vmem:[%s2133_s2 + $0xc0] sm:$0xff] }
  0x12   :  { %239 = vperm.xlu1 %1479, %v69_v19   ;;  %234 = vperm.xlu0 %1478, %v68_v20   ;;  %v52_v53 = vld [vmem:[%s2135_s1 + $0xc0] sm:$0xff]  ;;  %v53_v54 = vld [vmem:[%s2135_s1 + $0xc8] sm:$0xff]  ;;  %v87_v55 = vld [vmem:[%s2133_s2 + $0xd8] sm:$0xff] }
  0x13   :  { %1328 = vmatprep.mubr.msk.f32.mxu0 %vm352_vm0, %v36_v21  ;;  %v86_v56 = vld [vmem:[%s2133_s2 + $0xd0] sm:$0xff]  ;;  %v55_v58 = vld [vmem:[%s2135_s1 + $0xd8] sm:$0xff]  ;;  %v89_v59 = vld [vmem:[%s2133_s2 + $0xe8] sm:$0xff]  ;;  %v1485_v21 = vmov 0.0|0.0  }
  0x14   :  { %v54_v57 = vld [vmem:[%s2135_s1 + $0xd0] sm:$0xff]  ;;  %v88_v60 = vld [vmem:[%s2133_s2 + $0xe0] sm:$0xff]  ;;  %v57_v62 = vld [vmem:[%s2135_s1 + $0xe8] sm:$0xff]  ;;  %1364 = vmatprep.subr.bf16.mxu0 %v1485_v21  ;;  %1444 = vmatprep.subr.bf16.mxu1 %v1485_v21 }
  0x15   :  { %1329 = vmatmul.mubr.msk.f32.gmra.mrb[8].mxu0 %vm352_vm0, %v37_v22  ;;  %v56_v61 = vld [vmem:[%s2135_s1 + $0xe0] sm:$0xff]  ;;  %v91_v63 = vld [vmem:[%s2133_s2 + $0xf8] sm:$0xff]  ;;  %v90_v0 = vld [vmem:[%s2133_s2 + $0xf0] sm:$0xff] }
  0x16   :  { %249 = vperm.xlu1 %1479, %v71_v23   ;;  %244 = vperm.xlu0 %1478, %v70_v24   ;;  %v58_v1 = vld [vmem:[%s2135_s1 + $0xf0] sm:$0xff]  ;;  %v59_v2 = vld [vmem:[%s2135_s1 + $0xf8] sm:$0xff]  ;;  %v173_v3 = vld [vmem:[%s2137_s4 + $0x88] sm:$0xff] }
  0x17   :  { %1331 = vmatprep.mubr.msk.f32.mxu0 %vm352_vm0, %v38_v25  ;;  %v172_v4 = vld [vmem:[%s2137_s4 + $0x80] sm:$0xff]  ;;  %v157_v5 = vld [vmem:[%s2137_s4 + $0x8] sm:$0xff]  ;;  %v175_v7 = vld [vmem:[%s2137_s4 + $0x98] sm:$0xff] }
  0x18   :  { %v156_v6 = vld [vmem:[%s2137_s4] sm:$0xff]  ;;  %v174_v8 = vld [vmem:[%s2137_s4 + $0x90] sm:$0xff]  ;;  %v159_v9 = vld [vmem:[%s2137_s4 + $0x18] sm:$0xff] }
  0x19   :  { %1332 = vmatmul.mubr.msk.f32.gmra.mrb[10].mxu0 %vm352_vm0, %v39_v26  ;;  %v158_v10 = vld [vmem:[%s2137_s4 + $0x10] sm:$0xff]  ;;  %v177_v11 = vld [vmem:[%s2137_s4 + $0xa8] sm:$0xff]  ;;  %v176_v12 = vld [vmem:[%s2137_s4 + $0xa0] sm:$0xff] }
  0x1a   :  { %259 = vperm.xlu1 %1479, %v73_v27   ;;  %254 = vperm.xlu0 %1478, %v72_v28   ;;  %v161_v13 = vld [vmem:[%s2137_s4 + $0x28] sm:$0xff]  ;;  %v160_v14 = vld [vmem:[%s2137_s4 + $0x20] sm:$0xff]  ;;  %v179_v15 = vld [vmem:[%s2137_s4 + $0xb8] sm:$0xff] }
  0x1b   :  { %1334 = vmatprep.mubr.msk.f32.mxu0 %vm352_vm0, %v40_v29  ;;  %v178_v16 = vld [vmem:[%s2137_s4 + $0xb0] sm:$0xff]  ;;  %v163_v17 = vld [vmem:[%s2137_s4 + $0x38] sm:$0xff]  ;;  %v181_v19 = vld [vmem:[%s2137_s4 + $0xc8] sm:$0xff] }
  0x1c   :  { %v162_v18 = vld [vmem:[%s2137_s4 + $0x30] sm:$0xff]  ;;  %v180_v20 = vld [vmem:[%s2137_s4 + $0xc0] sm:$0xff]  ;;  %v165_v22 = vld [vmem:[%s2137_s4 + $0x48] sm:$0xff] }
  0x1d   :  { %1335 = vmatmul.mubr.msk.f32.gmra.mrb[12].mxu0 %vm352_vm0, %v41_v30  ;;  %v164_v23 = vld [vmem:[%s2137_s4 + $0x40] sm:$0xff]  ;;  %v183_v24 = vld [vmem:[%s2137_s4 + $0xd8] sm:$0xff]  ;;  %v182_v25 = vld [vmem:[%s2137_s4 + $0xd0] sm:$0xff] }
  0x1e   :  { %269 = vperm.xlu1 %1479, %v75_v31   ;;  %264 = vperm.xlu0 %1478, %v74_v32   ;;  %v167_v26 = vld [vmem:[%s2137_s4 + $0x58] sm:$0xff]  ;;  %v166_v27 = vld [vmem:[%s2137_s4 + $0x50] sm:$0xff]  ;;  %v185_v28 = vld [vmem:[%s2137_s4 + $0xe8] sm:$0xff] }
  0x1f   :  { %1337 = vmatprep.mubr.msk.f32.mxu0 %vm352_vm0, %v42_v33  ;;  %v184_v29 = vld [vmem:[%s2137_s4 + $0xe0] sm:$0xff]  ;;  %v169_v30 = vld [vmem:[%s2137_s4 + $0x68] sm:$0xff]  ;;  %v187_v32 = vld [vmem:[%s2137_s4 + $0xf8] sm:$0xff] }
  0x20   :  { %v168_v31 = vld [vmem:[%s2137_s4 + $0x60] sm:$0xff]  ;;  %v186_v33 = vld [vmem:[%s2137_s4 + $0xf0] sm:$0xff] }
  0x21   :  { %1338 = vmatmul.mubr.msk.f32.gmra.mrb[14].mxu0 %vm352_vm0, %v43_v34  ;;  %v171_v34 = vld [vmem:[%s2137_s4 + $0x78] sm:$0xff] }
  0x22   :  { %279 = vperm.xlu1 %1479, %v77_v35   ;;  %274 = vperm.xlu0 %1478, %v76_v36   ;;  %v170_v35 = vld [vmem:[%s2137_s4 + $0x70] sm:$0xff]  ;;  %v1245_v36 = vld [vmem:[#allocation2] ss:$0 sm:$0xff] }
  0x23   :  { %1340 = vmatprep.mubr.msk.f32.mxu0 %vm352_vm0, %v44_v37  ;;  %v93_v37 = vld [vmem:[%s2138_s3 + $0x8] sm:$0xff] }
  0x25   :  { %1341 = vmatmul.mubr.msk.f32.gmra.mrb[16].mxu0 %vm352_vm0, %v45_v38  ;;  %v123_v38 = vld [vmem:[%s2138_s3 + $0xf8] sm:$0xff] }
  0x26   :  { %289 = vperm.xlu1 %1479, %v79_v39   ;;  %284 = vperm.xlu0 %1478, %v78_v40  }
  0x27   :  { %1343 = vmatprep.mubr.msk.f32.mxu0 %vm352_vm0, %v46_v41  ;;  %1005 = vmatprep.mubr.f32.mxu1 %v123_v38 }
  0x29   :  { %1344 = vmatmul.mubr.msk.f32.gmra.mrb[18].mxu0 %vm352_vm0, %v47_v42 }
  0x2a   :  { %299 = vperm.xlu1 %1479, %v81_v43   ;;  %294 = vperm.xlu0 %1478, %v80_v44  }
  0x2b   :  { %1346 = vmatprep.mubr.msk.f32.mxu0 %vm352_vm0, %v48_v45 }
  0x2d   :  { %1347 = vmatmul.mubr.msk.f32.gmra.mrb[20].mxu0 %vm352_vm0, %v49_v46 }
  0x2e   :  { %309 = vperm.xlu1 %1479, %v83_v47   ;;  %304 = vperm.xlu0 %1478, %v82_v48  }
  0x2f   :  { %1349 = vmatprep.mubr.msk.f32.mxu0 %vm352_vm0, %v50_v49 }
  0x31   :  { %1350 = vmatmul.mubr.msk.f32.gmra.mrb[22].mxu0 %vm352_vm0, %v51_v50 }
  0x32   :  { %319 = vperm.xlu1 %1479, %v85_v51   ;;  %314 = vperm.xlu0 %1478, %v84_v52  }
  0x33   :  { %1352 = vmatprep.mubr.msk.f32.mxu0 %vm352_vm0, %v52_v53 }
  0x35   :  { %1353 = vmatmul.mubr.msk.f32.gmra.mrb[24].mxu0 %vm352_vm0, %v53_v54 }
  0x36   :  { %329 = vperm.xlu1 %1479, %v87_v55   ;;  %324 = vperm.xlu0 %1478, %v86_v56  }
  0x37   :  { %1355 = vmatprep.mubr.msk.f32.mxu0 %vm352_vm0, %v54_v57 }
  0x39   :  { %1356 = vmatmul.mubr.msk.f32.gmra.mrb[26].mxu0 %vm352_vm0, %v55_v58 }
  0x3a   :  { %339 = vperm.xlu1 %1479, %v89_v59   ;;  %334 = vperm.xlu0 %1478, %v88_v60  }
  0x3b   :  { %1358 = vmatprep.mubr.msk.f32.mxu0 %vm352_vm0, %v56_v61 }
  0x3d   :  { %1359 = vmatmul.mubr.msk.f32.gmra.mrb[28].mxu0 %vm352_vm0, %v57_v62 }
  0x3e   :  { %349 = vperm.xlu1 %1479, %v91_v63   ;;  %344 = vperm.xlu0 %1478, %v90_v0  }
  0x3f   :  { %1361 = vmatprep.mubr.msk.f32.mxu0 %vm352_vm0, %v58_v1 }
  0x41   :  { %1362 = vmatmul.mubr.msk.f32.gmra.mrb[30].mxu0 %vm352_vm0, %v59_v2 }
  0x42   :  { %793 = vperm.xlu1 %1479, %v173_v3   ;;  %788 = vperm.xlu0 %1478, %v172_v4  }
  0x43   :  { %930 = vmatprep.mubr.f32.mxu0 %v93_v37 }
  0x46   :  { %713 = vperm.xlu1 %1479, %v157_v5   ;;  %708 = vperm.xlu0 %1478, %v156_v6  }
  0x4a   :  { %803 = vperm.xlu1 %1479, %v175_v7   ;;  %798 = vperm.xlu0 %1478, %v174_v8  }
  0x4e   :  { %723 = vperm.xlu1 %1479, %v159_v9   ;;  %718 = vperm.xlu0 %1478, %v158_v10  }
  0x52   :  { %813 = vperm.xlu1 %1479, %v177_v11   ;;  %808 = vperm.xlu0 %1478, %v176_v12  }
  0x56   :  { %733 = vperm.xlu1 %1479, %v161_v13   ;;  %728 = vperm.xlu0 %1478, %v160_v14  }
  0x5a   :  { %823 = vperm.xlu1 %1479, %v179_v15   ;;  %818 = vperm.xlu0 %1478, %v178_v16  }
  0x5e   :  { %743 = vperm.xlu1 %1479, %v163_v17   ;;  %738 = vperm.xlu0 %1478, %v162_v18  }
  0x62   :  { %833 = vperm.xlu1 %1479, %v181_v19   ;;  %828 = vperm.xlu0 %1478, %v180_v20  }
  0x66   :  { %753 = vperm.xlu1 %1479, %v165_v22   ;;  %748 = vperm.xlu0 %1478, %v164_v23  }
  0x6a   :  { %843 = vperm.xlu1 %1479, %v183_v24   ;;  %838 = vperm.xlu0 %1478, %v182_v25  }
  0x6e   :  { %763 = vperm.xlu1 %1479, %v167_v26   ;;  %758 = vperm.xlu0 %1478, %v166_v27  }
  0x72   :  { %853 = vperm.xlu1 %1479, %v185_v28   ;;  %848 = vperm.xlu0 %1478, %v184_v29  }
  0x76   :  { %773 = vperm.xlu1 %1479, %v169_v30   ;;  %768 = vperm.xlu0 %1478, %v168_v31  }
  0x7a   :  { %863 = vperm.xlu1 %1479, %v187_v32   ;;  %858 = vperm.xlu0 %1478, %v186_v33  }
  0x7e   :  { %783 = vperm.xlu1 %1479, %v171_v34   ;;  %778 = vperm.xlu0 %1478, %v170_v35  }
  0x81   :  { %v205_v39 = vpop.permute.xlu1 %204  ;;  %v195_v40 = vpop.permute.xlu0 %194 }
  0x82   :  { %1129 = vperm.xlu0 %1478, %v1245_v36  }
  0x85   :  { %v210_v41 = vpop.permute.xlu1 %209  ;;  %v200_v42 = vpop.permute.xlu0 %199 }
  0x89   :  { %v220_v43 = vpop.permute.xlu1 %219  ;;  %v215_v44 = vpop.permute.xlu0 %214 }
  0x8d   :  { %v230_v45 = vpop.permute.xlu1 %229  ;;  %v225_v46 = vpop.permute.xlu0 %224 }
  0x91   :  { %v240_v47 = vpop.permute.xlu1 %239  ;;  %v235_v48 = vpop.permute.xlu0 %234 }
  0x95   :  { %v250_v49 = vpop.permute.xlu1 %249  ;;  %v245_v51 = vpop.permute.xlu0 %244 }
  0x99   :  { %v260_v60 = vpop.permute.xlu1 %259  ;;  %v255_v63 = vpop.permute.xlu0 %254 }
  0x9d   :  { %v270_v8 = vpop.permute.xlu1 %269  ;;  %v265_v11 = vpop.permute.xlu0 %264 }
  0xa1   :  { %v280_v22 = vpop.permute.xlu1 %279  ;;  %v275_v25 = vpop.permute.xlu0 %274 }
  0xa5   :  { %v290_v34 = vpop.permute.xlu1 %289  ;;  %v285_v37 = vpop.permute.xlu0 %284 }
  0xd8   :  { %v1318_v50 = vpop.f32.mrb[0].mxu0 }
  0xd9   :  { %v521_v52 = vadd.f32 %v1318_v50, %v200_v42  ;;  %v515_v53 = vpop.f32.mrb[1].mxu0  ;;  %v295_v50 = vpop.permute.xlu0 %294 }
  0xda   :  { %v516_v54 = vadd.f32 %v515_v53, %v195_v40 }
  0xdb   :  { %v675_v55 = vmax.f32 %v521_v52, 0.0 }
  0xdc   :  { %v674_v56 = vmax.f32 %v516_v54, 0.0  ;;  %v1321_v57 = vpop.f32.mrb[2].mxu0 }
  0xdd   :  { %v531_v58 = vadd.f32 %v1321_v57, %v210_v41  ;;  %v525_v59 = vpop.f32.mrb[3].mxu0 }
  0xde   :  { %v1365_v61 = vpack.c.bf16 %v675_v55, %v674_v56  ;;  %v526_v62 = vadd.f32 %v525_v59, %v205_v39 }
  0xdf   :  { %v677_v0 = vmax.f32 %v531_v58, 0.0 }
  0xe0   :  { %v676_v1 = vmax.f32 %v526_v62, 0.0  ;;  %v1324_v2 = vpop.f32.mrb[4].mxu0  ;;  %1366 = vmatpush1.bf16.msra.mxu0 %v1365_v61  ;;  %1460 = vmatpush1.bf16.msra.mxu1 %v1365_v61  ;;  %v305_v62 = vpop.permute.xlu0 %304 }
  0xe1   :  { %v541_v3 = vadd.f32 %v1324_v2, %v220_v43  ;;  %v535_v4 = vpop.f32.mrb[5].mxu0  ;;  %1367 = vmatprep.subr.bf16.mxu0 %v1485_v21  ;;  %1445 = vmatprep.subr.bf16.mxu1 %v1485_v21 }
  0xe2   :  { %v1368_v5 = vpack.c.bf16 %v677_v0, %v676_v1  ;;  %v536_v6 = vadd.f32 %v535_v4, %v215_v44 }
  0xe3   :  { %v679_v7 = vmax.f32 %v541_v3, 0.0 }
  0xe4   :  { %v678_v9 = vmax.f32 %v536_v6, 0.0  ;;  %v1327_v10 = vpop.f32.mrb[6].mxu0  ;;  %1369 = vmatpush1.bf16.msra.mxu0 %v1368_v5  ;;  %1461 = vmatpush1.bf16.msra.mxu1 %v1368_v5 }
  0xe5   :  { %v551_v12 = vadd.f32 %v1327_v10, %v230_v45  ;;  %v545_v13 = vpop.f32.mrb[7].mxu0  ;;  %1370 = vmatprep.subr.bf16.mxu0 %v1485_v21  ;;  %1446 = vmatprep.subr.bf16.mxu1 %v1485_v21 }
  0xe6   :  { %v1371_v14 = vpack.c.bf16 %v679_v7, %v678_v9  ;;  %v546_v15 = vadd.f32 %v545_v13, %v225_v46 }
  0xe7   :  { %v681_v16 = vmax.f32 %v551_v12, 0.0 }
  0xe8   :  { %v680_v17 = vmax.f32 %v546_v15, 0.0  ;;  %v1330_v18 = vpop.f32.mrb[8].mxu0  ;;  %1372 = vmatpush1.bf16.msra.mxu0 %v1371_v14  ;;  %1462 = vmatpush1.bf16.msra.mxu1 %v1371_v14 }
  0xe9   :  { %v561_v19 = vadd.f32 %v1330_v18, %v240_v47  ;;  %v555_v20 = vpop.f32.mrb[9].mxu0  ;;  %1373 = vmatprep.subr.bf16.mxu0 %v1485_v21  ;;  %1447 = vmatprep.subr.bf16.mxu1 %v1485_v21  ;;  %v300_v47 = vpop.permute.xlu1 %299 }
  0xea   :  { %v1374_v23 = vpack.c.bf16 %v681_v16, %v680_v17  ;;  %v556_v24 = vadd.f32 %v555_v20, %v235_v48 }
  0xeb   :  { %v683_v26 = vmax.f32 %v561_v19, 0.0 }
  0xec   :  { %v682_v27 = vmax.f32 %v556_v24, 0.0  ;;  %v1333_v28 = vpop.f32.mrb[10].mxu0  ;;  %1375 = vmatpush1.bf16.msra.mxu0 %v1374_v23  ;;  %1463 = vmatpush1.bf16.msra.mxu1 %v1374_v23 }
  0xed   :  { %v571_v29 = vadd.f32 %v1333_v28, %v250_v49  ;;  %v565_v30 = vpop.f32.mrb[11].mxu0  ;;  %1376 = vmatprep.subr.bf16.mxu0 %v1485_v21  ;;  %1448 = vmatprep.subr.bf16.mxu1 %v1485_v21  ;;  %v310_v59 = vpop.permute.xlu1 %309 }
  0xee   :  { %v1377_v31 = vpack.c.bf16 %v683_v26, %v682_v27  ;;  %v566_v32 = vadd.f32 %v565_v30, %v245_v51 }
  0xef   :  { %v685_v33 = vmax.f32 %v571_v29, 0.0 }
  0xf0   :  { %v684_v35 = vmax.f32 %v566_v32, 0.0  ;;  %v1336_v36 = vpop.f32.mrb[12].mxu0  ;;  %1378 = vmatpush1.bf16.msra.mxu0 %v1377_v31  ;;  %1464 = vmatpush1.bf16.msra.mxu1 %v1377_v31 }
  0xf1   :  { %v581_v38 = vadd.f32 %v1336_v36, %v260_v60  ;;  %v575_v39 = vpop.f32.mrb[13].mxu0  ;;  %1379 = vmatprep.subr.bf16.mxu0 %v1485_v21  ;;  %1449 = vmatprep.subr.bf16.mxu1 %v1485_v21 }
  0xf2   :  { %v1380_v40 = vpack.c.bf16 %v685_v33, %v684_v35  ;;  %v576_v41 = vadd.f32 %v575_v39, %v255_v63 }
  0xf3   :  { %v687_v42 = vmax.f32 %v581_v38, 0.0 }
  0xf4   :  { %v686_v43 = vmax.f32 %v576_v41, 0.0  ;;  %v1339_v44 = vpop.f32.mrb[14].mxu0  ;;  %1381 = vmatpush1.bf16.msra.mxu0 %v1380_v40  ;;  %1465 = vmatpush1.bf16.msra.mxu1 %v1380_v40 }
  0xf5   :  { %v591_v45 = vadd.f32 %v1339_v44, %v270_v8  ;;  %v585_v46 = vpop.f32.mrb[15].mxu0  ;;  %1382 = vmatprep.subr.bf16.mxu0 %v1485_v21  ;;  %1450 = vmatprep.subr.bf16.mxu1 %v1485_v21  ;;  %v320_v8 = vpop.permute.xlu1 %319 }
  0xf6   :  { %v1383_v48 = vpack.c.bf16 %v687_v42, %v686_v43  ;;  %v586_v49 = vadd.f32 %v585_v46, %v265_v11  ;;  %v315_v11 = vpop.permute.xlu0 %314 }
  0xf7   :  { %v689_v51 = vmax.f32 %v591_v45, 0.0 }
  0xf8   :  { %v688_v52 = vmax.f32 %v586_v49, 0.0  ;;  %v1342_v53 = vpop.f32.mrb[16].mxu0  ;;  %1384 = vmatpush1.bf16.msra.mxu0 %v1383_v48  ;;  %1466 = vmatpush1.bf16.msra.mxu1 %v1383_v48 }
  0xf9   :  { %v601_v54 = vadd.f32 %v1342_v53, %v280_v22  ;;  %v595_v55 = vpop.f32.mrb[17].mxu0  ;;  %1385 = vmatprep.subr.bf16.mxu0 %v1485_v21  ;;  %1451 = vmatprep.subr.bf16.mxu1 %v1485_v21  ;;  %v330_v20 = vpop.permute.xlu1 %329 }
  0xfa   :  { %v1386_v56 = vpack.c.bf16 %v689_v51, %v688_v52  ;;  %v596_v57 = vadd.f32 %v595_v55, %v275_v25  ;;  %v325_v24 = vpop.permute.xlu0 %324 }
  0xfb   :  { %v691_v58 = vmax.f32 %v601_v54, 0.0 }
  0xfc   :  { %v690_v60 = vmax.f32 %v596_v57, 0.0  ;;  %v1345_v61 = vpop.f32.mrb[18].mxu0  ;;  %1387 = vmatpush1.bf16.msra.mxu0 %v1386_v56  ;;  %1467 = vmatpush1.bf16.msra.mxu1 %v1386_v56  ;;  %v92_v57 = vld [vmem:[%s2138_s3] sm:$0xff] }
  0xfd   :  { %v611_v63 = vadd.f32 %v1345_v61, %v290_v34  ;;  %v605_v0 = vpop.f32.mrb[19].mxu0  ;;  %1388 = vmatprep.subr.bf16.mxu0 %v1485_v21  ;;  %1452 = vmatprep.subr.bf16.mxu1 %v1485_v21  ;;  %v340_v34 = vpop.permute.xlu1 %339  ;;  %v124_v61 = vld [vmem:[%s2138_s3 + $0x100] sm:$0xff] }
  0xfe   :  { %v1389_v1 = vpack.c.bf16 %v691_v58, %v690_v60  ;;  %v606_v2 = vadd.f32 %v605_v0, %v285_v37  ;;  %v335_v37 = vpop.permute.xlu0 %334  ;;  %v122_v58 = vld [vmem:[%s2138_s3 + $0xf0] sm:$0xff]  ;;  %v125_v60 = vld [vmem:[%s2138_s3 + $0x108] sm:$0xff]  ;;  %v96_v0 = vld [vmem:[%s2138_s3 + $0x20] sm:$0xff] }
  0xff   :  { %v693_v3 = vmax.f32 %v611_v63, 0.0  ;;  %v127_v63 = vld [vmem:[%s2138_s3 + $0x118] sm:$0xff] }
 0x100   :  { %v692_v4 = vmax.f32 %v606_v2, 0.0  ;;  %v1348_v5 = vpop.f32.mrb[20].mxu0  ;;  %1390 = vmatpush1.bf16.msra.mxu0 %v1389_v1  ;;  %1468 = vmatpush1.bf16.msra.mxu1 %v1389_v1  ;;  %v126_v1 = vld [vmem:[%s2138_s3 + $0x110] sm:$0xff]  ;;  %v99_v2 = vld [vmem:[%s2138_s3 + $0x38] sm:$0xff] }
 0x101   :  { %v621_v6 = vadd.f32 %v1348_v5, %v300_v47  ;;  %v615_v7 = vpop.f32.mrb[21].mxu0  ;;  %1391 = vmatprep.subr.bf16.mxu0 %v1485_v21  ;;  %1453 = vmatprep.subr.bf16.mxu1 %v1485_v21  ;;  %v350_v46 = vpop.permute.xlu1 %349  ;;  %v128_v5 = vld [vmem:[%s2138_s3 + $0x120] sm:$0xff] }
 0x102   :  { %v1392_v9 = vpack.c.bf16 %v693_v3, %v692_v4  ;;  %v616_v10 = vadd.f32 %v615_v7, %v295_v50  ;;  %v345_v49 = vpop.permute.xlu0 %344  ;;  %v129_v3 = vld [vmem:[%s2138_s3 + $0x128] sm:$0xff]  ;;  %v98_v4 = vld [vmem:[%s2138_s3 + $0x30] sm:$0xff]  ;;  %v131_v7 = vld [vmem:[%s2138_s3 + $0x138] sm:$0xff] }
 0x103   :  { %v695_v12 = vmax.f32 %v621_v6, 0.0  ;;  %v101_v6 = vld [vmem:[%s2138_s3 + $0x48] sm:$0xff] }
 0x104   :  { %v694_v13 = vmax.f32 %v616_v10, 0.0  ;;  %v1351_v14 = vpop.f32.mrb[22].mxu0  ;;  %1393 = vmatpush1.bf16.msra.mxu0 %v1392_v9  ;;  %1469 = vmatpush1.bf16.msra.mxu1 %v1392_v9  ;;  %v130_v9 = vld [vmem:[%s2138_s3 + $0x130] sm:$0xff]  ;;  %v103_v10 = vld [vmem:[%s2138_s3 + $0x58] sm:$0xff] }
 0x105   :  { %v631_v15 = vadd.f32 %v1351_v14, %v310_v59  ;;  %v625_v16 = vpop.f32.mrb[23].mxu0  ;;  %1394 = vmatprep.subr.bf16.mxu0 %v1485_v21  ;;  %1454 = vmatprep.subr.bf16.mxu1 %v1485_v21  ;;  %v95_v59 = vld [vmem:[%s2138_s3 + $0x18] sm:$0xff]  ;;  %v105_v14 = vld [vmem:[%s2138_s3 + $0x68] sm:$0xff] }
 0x106   :  { %v1395_v17 = vpack.c.bf16 %v695_v12, %v694_v13  ;;  %v626_v18 = vadd.f32 %v625_v16, %v305_v62  ;;  %v97_v62 = vld [vmem:[%s2138_s3 + $0x28] sm:$0xff]  ;;  %v102_v12 = vld [vmem:[%s2138_s3 + $0x50] sm:$0xff]  ;;  %v132_v13 = vld [vmem:[%s2138_s3 + $0x140] sm:$0xff] }
 0x107   :  { %v697_v19 = vmax.f32 %v631_v15, 0.0  ;;  %v135_v15 = vld [vmem:[%s2138_s3 + $0x158] sm:$0xff]  ;;  %v104_v16 = vld [vmem:[%s2138_s3 + $0x60] sm:$0xff] }
 0x108   :  { %v696_v22 = vmax.f32 %v626_v18, 0.0  ;;  %v1354_v23 = vpop.f32.mrb[24].mxu0  ;;  %1396 = vmatpush1.bf16.msra.mxu0 %v1395_v17  ;;  %1470 = vmatpush1.bf16.msra.mxu1 %v1395_v17  ;;  %v134_v17 = vld [vmem:[%s2138_s3 + $0x150] sm:$0xff]  ;;  %v107_v18 = vld [vmem:[%s2138_s3 + $0x78] sm:$0xff] }
 0x109   :  { %v641_v25 = vadd.f32 %v1354_v23, %v320_v8  ;;  %v635_v26 = vpop.f32.mrb[25].mxu0  ;;  %1397 = vmatprep.subr.bf16.mxu0 %v1485_v21  ;;  %1455 = vmatprep.subr.bf16.mxu1 %v1485_v21  ;;  %v100_v8 = vld [vmem:[%s2138_s3 + $0x40] sm:$0xff]  ;;  %v109_v23 = vld [vmem:[%s2138_s3 + $0x88] sm:$0xff] }
 0x10a   :  { %v1398_v27 = vpack.c.bf16 %v697_v19, %v696_v22  ;;  %v636_v28 = vadd.f32 %v635_v26, %v315_v11  ;;  %v133_v11 = vld [vmem:[%s2138_s3 + $0x148] sm:$0xff]  ;;  %v136_v22 = vld [vmem:[%s2138_s3 + $0x160] sm:$0xff]  ;;  %v138_v26 = vld [vmem:[%s2138_s3 + $0x170] sm:$0xff] }
 0x10b   :  { %v699_v29 = vmax.f32 %v641_v25, 0.0  ;;  %v137_v19 = vld [vmem:[%s2138_s3 + $0x168] sm:$0xff]  ;;  %v108_v25 = vld [vmem:[%s2138_s3 + $0x80] sm:$0xff] }
 0x10c   :  { %v698_v30 = vmax.f32 %v636_v28, 0.0  ;;  %v1357_v31 = vpop.f32.mrb[26].mxu0  ;;  %1399 = vmatpush1.bf16.msra.mxu0 %v1398_v27  ;;  %1471 = vmatpush1.bf16.msra.mxu1 %v1398_v27  ;;  %v111_v27 = vld [vmem:[%s2138_s3 + $0x98] sm:$0xff]  ;;  %v141_v28 = vld [vmem:[%s2138_s3 + $0x188] sm:$0xff] }
 0x10d   :  { %v651_v32 = vadd.f32 %v1357_v31, %v330_v20  ;;  %v645_v33 = vpop.f32.mrb[27].mxu0  ;;  %1400 = vmatprep.subr.bf16.mxu0 %v1485_v21  ;;  %1456 = vmatprep.subr.bf16.mxu1 %v1485_v21  ;;  %v106_v20 = vld [vmem:[%s2138_s3 + $0x70] sm:$0xff]  ;;  %v113_v31 = vld [vmem:[%s2138_s3 + $0xa8] sm:$0xff] }
 0x10e   :  { %v1401_v35 = vpack.c.bf16 %v699_v29, %v698_v30  ;;  %v646_v36 = vadd.f32 %v645_v33, %v325_v24  ;;  %v139_v24 = vld [vmem:[%s2138_s3 + $0x178] sm:$0xff]  ;;  %v110_v29 = vld [vmem:[%s2138_s3 + $0x90] sm:$0xff]  ;;  %v140_v30 = vld [vmem:[%s2138_s3 + $0x180] sm:$0xff] }
 0x10f   :  { %v701_v38 = vmax.f32 %v651_v32, 0.0  ;;  %v143_v32 = vld [vmem:[%s2138_s3 + $0x198] sm:$0xff]  ;;  %v112_v33 = vld [vmem:[%s2138_s3 + $0xa0] sm:$0xff] }
 0x110   :  { %v700_v39 = vmax.f32 %v646_v36, 0.0  ;;  %v1360_v40 = vpop.f32.mrb[28].mxu0  ;;  %1402 = vmatpush1.bf16.msra.mxu0 %v1401_v35  ;;  %1472 = vmatpush1.bf16.msra.mxu1 %v1401_v35  ;;  %v115_v35 = vld [vmem:[%s2138_s3 + $0xb8] sm:$0xff]  ;;  %v145_v36 = vld [vmem:[%s2138_s3 + $0x1a8] sm:$0xff] }
 0x111   :  { %v661_v41 = vadd.f32 %v1360_v40, %v340_v34  ;;  %v655_v42 = vpop.f32.mrb[29].mxu0  ;;  %1403 = vmatprep.subr.bf16.mxu0 %v1485_v21  ;;  %1457 = vmatprep.subr.bf16.mxu1 %v1485_v21  ;;  %v142_v34 = vld [vmem:[%s2138_s3 + $0x190] sm:$0xff]  ;;  %v147_v40 = vld [vmem:[%s2138_s3 + $0x1b8] sm:$0xff] }
 0x112   :  { %v1404_v43 = vpack.c.bf16 %v701_v38, %v700_v39  ;;  %v656_v44 = vadd.f32 %v655_v42, %v335_v37  ;;  %v114_v37 = vld [vmem:[%s2138_s3 + $0xb0] sm:$0xff]  ;;  %v144_v38 = vld [vmem:[%s2138_s3 + $0x1a0] sm:$0xff]  ;;  %v117_v39 = vld [vmem:[%s2138_s3 + $0xc8] sm:$0xff] }
 0x113   :  { %v703_v45 = vmax.f32 %v661_v41, 0.0  ;;  %v116_v41 = vld [vmem:[%s2138_s3 + $0xc0] sm:$0xff]  ;;  %v146_v42 = vld [vmem:[%s2138_s3 + $0x1b0] sm:$0xff] }
 0x114   :  { %v702_v47 = vmax.f32 %v656_v44, 0.0  ;;  %v1363_v48 = vpop.f32.mrb[30].mxu0  ;;  %1405 = vmatpush1.bf16.msra.mxu0 %v1404_v43  ;;  %1473 = vmatpush1.bf16.msra.mxu1 %v1404_v43  ;;  %v119_v43 = vld [vmem:[%s2138_s3 + $0xd8] sm:$0xff]  ;;  %v149_v44 = vld [vmem:[%s2138_s3 + $0x1c8] sm:$0xff] }
 0x115   :  { %v671_v50 = vadd.f32 %v1363_v48, %v350_v46  ;;  %v665_v51 = vpop.f32.mrb[31].mxu0  ;;  %1406 = vmatprep.subr.bf16.mxu0 %v1485_v21  ;;  %1458 = vmatprep.subr.bf16.mxu1 %v1485_v21  ;;  %v148_v46 = vld [vmem:[%s2138_s3 + $0x1c0] sm:$0xff]  ;;  %v151_v48 = vld [vmem:[%s2138_s3 + $0x1d8] sm:$0xff] }
 0x116   :  { %v1407_v52 = vpack.c.bf16 %v703_v45, %v702_v47  ;;  %v666_v53 = vadd.f32 %v665_v51, %v345_v49  ;;  %v118_v45 = vld [vmem:[%s2138_s3 + $0xd0] sm:$0xff]  ;;  %v121_v47 = vld [vmem:[%s2138_s3 + $0xe8] sm:$0xff]  ;;  %v120_v49 = vld [vmem:[%s2138_s3 + $0xe0] sm:$0xff] }
 0x117   :  { %v705_v54 = vmax.f32 %v671_v50, 0.0  ;;  %v150_v50 = vld [vmem:[%s2138_s3 + $0x1d0] sm:$0xff]  ;;  %v153_v51 = vld [vmem:[%s2138_s3 + $0x1e8] sm:$0xff] }
 0x118   :  { %v704_v55 = vmax.f32 %v666_v53, 0.0  ;;  %1408 = vmatpush1.bf16.msra.mxu0 %v1407_v52  ;;  %1474 = vmatpush1.bf16.msra.mxu1 %v1407_v52  ;;  %v152_v52 = vld [vmem:[%s2138_s3 + $0x1e0] sm:$0xff]  ;;  %v155_v53 = vld [vmem:[%s2138_s3 + $0x1f8] sm:$0xff] }
 0x119   :  { %1409 = vmatprep.subr.bf16.mxu0 %v1485_v21  ;;  %1459 = vmatprep.subr.bf16.mxu1 %v1485_v21  ;;  %v94_v21 = vld [vmem:[%s2138_s3 + $0x10] sm:$0xff] }
 0x11a   :  { %v1410_v56 = vpack.c.bf16 %v705_v54, %v704_v55  ;;  %v154_v54 = vld [vmem:[%s2138_s3 + $0x1f0] sm:$0xff]  ;;  %v189_v55 = vld [vmem:[%s2139_s5 + $0x8] sm:$0xff] }
 0x11c   :  { %1411 = vmatpush1.bf16.msra.mxu0 %v1410_v56  ;;  %1475 = vmatpush1.bf16.msra.mxu1 %v1410_v56  ;;  %v794_v56 = vpop.permute.xlu1 %793 }
 0x11f   :  { %931 = vmatmul.mubr.f32.vlgmr.msra.gmra.mrb[32].mxu0 %v92_v57  ;;  %1006 = vmatmul.mubr.f32.vlgmr.msra.gmra.mrb[0].mxu1 %v122_v58  ;;  %v789_v57 = vpop.permute.xlu0 %788 }
 0x120   :  { %935 = vmatprep.mubr.f32.mxu0 %v95_v59  ;;  %1010 = vmatprep.mubr.f32.mxu1 %v125_v60  ;;  %v714_v58 = vpop.permute.xlu1 %713 }
 0x123   :  { %936 = vmatmul.mubr.f32.gmra.mrb[34].mxu0 %v94_v21  ;;  %1011 = vmatmul.mubr.f32.gmra.mrb[2].mxu1 %v124_v61  ;;  %v709_v59 = vpop.permute.xlu0 %708 }
 0x124   :  { %940 = vmatprep.mubr.f32.mxu0 %v97_v62  ;;  %1015 = vmatprep.mubr.f32.mxu1 %v127_v63  ;;  %v804_v60 = vpop.permute.xlu1 %803 }
 0x127   :  { %941 = vmatmul.mubr.f32.gmra.mrb[36].mxu0 %v96_v0  ;;  %1016 = vmatmul.mubr.f32.gmra.mrb[4].mxu1 %v126_v1  ;;  %v799_v21 = vpop.permute.xlu0 %798 }
 0x128   :  { %945 = vmatprep.mubr.f32.mxu0 %v99_v2  ;;  %1020 = vmatprep.mubr.f32.mxu1 %v129_v3  ;;  %v724_v61 = vpop.permute.xlu1 %723 }
 0x12b   :  { %946 = vmatmul.mubr.f32.gmra.mrb[38].mxu0 %v98_v4  ;;  %1021 = vmatmul.mubr.f32.gmra.mrb[6].mxu1 %v128_v5  ;;  %v719_v62 = vpop.permute.xlu0 %718 }
 0x12c   :  { %950 = vmatprep.mubr.f32.mxu0 %v101_v6  ;;  %1025 = vmatprep.mubr.f32.mxu1 %v131_v7  ;;  %v2079_v63 = vpop.permute.xlu1 %813 }
 0x12f   :  { %951 = vmatmul.mubr.f32.gmra.mrb[40].mxu0 %v100_v8  ;;  %1026 = vmatmul.mubr.f32.gmra.mrb[8].mxu1 %v130_v9  ;;  %v2081_v0 = vpop.permute.xlu0 %808 }
 0x130   :  { %955 = vmatprep.mubr.f32.mxu0 %v103_v10  ;;  %1030 = vmatprep.mubr.f32.mxu1 %v133_v11  ;;  %v734_v1 = vpop.permute.xlu1 %733 }
 0x133   :  { %956 = vmatmul.mubr.f32.gmra.mrb[42].mxu0 %v102_v12  ;;  %1031 = vmatmul.mubr.f32.gmra.mrb[10].mxu1 %v132_v13  ;;  %v729_v2 = vpop.permute.xlu0 %728 }
 0x134   :  { %960 = vmatprep.mubr.f32.mxu0 %v105_v14  ;;  %1035 = vmatprep.mubr.f32.mxu1 %v135_v15  ;;  %v2083_v3 = vpop.permute.xlu1 %823 }
 0x137   :  { %961 = vmatmul.mubr.f32.gmra.mrb[44].mxu0 %v104_v16  ;;  %1036 = vmatmul.mubr.f32.gmra.mrb[12].mxu1 %v134_v17  ;;  %v2085_v4 = vpop.permute.xlu0 %818 }
 0x138   :  { %965 = vmatprep.mubr.f32.mxu0 %v107_v18  ;;  %1040 = vmatprep.mubr.f32.mxu1 %v137_v19  ;;  %v2087_v5 = vpop.permute.xlu1 %743 }
 0x13b   :  { %966 = vmatmul.mubr.f32.gmra.mrb[46].mxu0 %v106_v20  ;;  %1041 = vmatmul.mubr.f32.gmra.mrb[14].mxu1 %v136_v22  ;;  %v2089_v6 = vpop.permute.xlu0 %738 }
 0x13c   :  { %970 = vmatprep.mubr.f32.mxu0 %v109_v23  ;;  %1045 = vmatprep.mubr.f32.mxu1 %v139_v24  ;;  %v2091_v7 = vpop.permute.xlu1 %833 }
 0x13f   :  { %971 = vmatmul.mubr.f32.gmra.mrb[48].mxu0 %v108_v25  ;;  %1046 = vmatmul.mubr.f32.gmra.mrb[16].mxu1 %v138_v26  ;;  %v2093_v8 = vpop.permute.xlu0 %828 }
 0x140   :  { %975 = vmatprep.mubr.f32.mxu0 %v111_v27  ;;  %1050 = vmatprep.mubr.f32.mxu1 %v141_v28  ;;  %v2097_v19 = vpop.permute.xlu1 %753 }
 0x143   :  { %976 = vmatmul.mubr.f32.gmra.mrb[50].mxu0 %v110_v29  ;;  %1051 = vmatmul.mubr.f32.gmra.mrb[18].mxu1 %v140_v30  ;;  %v2099_v20 = vpop.permute.xlu0 %748 }
 0x144   :  { %980 = vmatprep.mubr.f32.mxu0 %v113_v31  ;;  %1055 = vmatprep.mubr.f32.mxu1 %v143_v32 }
 0x147   :  { %981 = vmatmul.mubr.f32.gmra.mrb[52].mxu0 %v112_v33  ;;  %1056 = vmatmul.mubr.f32.gmra.mrb[20].mxu1 %v142_v34 }
 0x148   :  { %985 = vmatprep.mubr.f32.mxu0 %v115_v35  ;;  %1060 = vmatprep.mubr.f32.mxu1 %v145_v36 }
 0x14b   :  { %986 = vmatmul.mubr.f32.gmra.mrb[54].mxu0 %v114_v37  ;;  %1061 = vmatmul.mubr.f32.gmra.mrb[22].mxu1 %v144_v38 }
 0x14c   :  { %990 = vmatprep.mubr.f32.mxu0 %v117_v39  ;;  %1065 = vmatprep.mubr.f32.mxu1 %v147_v40  ;;  %v2101_v40 = vpop.permute.xlu1 %843 }
 0x14f   :  { %991 = vmatmul.mubr.f32.gmra.mrb[56].mxu0 %v116_v41  ;;  %1066 = vmatmul.mubr.f32.gmra.mrb[24].mxu1 %v146_v42  ;;  %v2103_v41 = vpop.permute.xlu0 %838 }
 0x150   :  { %995 = vmatprep.mubr.f32.mxu0 %v119_v43  ;;  %1070 = vmatprep.mubr.f32.mxu1 %v149_v44 }
 0x153   :  { %996 = vmatmul.mubr.f32.gmra.mrb[58].mxu0 %v118_v45  ;;  %1071 = vmatmul.mubr.f32.gmra.mrb[26].mxu1 %v148_v46 }
 0x154   :  { %1000 = vmatprep.mubr.f32.mxu0 %v121_v47  ;;  %1075 = vmatprep.mubr.f32.mxu1 %v151_v48 }
 0x157   :  { %1001 = vmatmul.mubr.f32.gmra.mrb[60].mxu0 %v120_v49  ;;  %1076 = vmatmul.mubr.f32.gmra.mrb[28].mxu1 %v150_v50 }
 0x158   :  { %1080 = vmatprep.mubr.f32.mxu1 %v153_v51  ;;  %1196 = vmatprep.mubr.f32.mxu0 %v189_v55 }
 0x15b   :  { %1081 = vmatmul.mubr.f32.gmra.mrb[30].mxu1 %v152_v52 }
 0x15c   :  { %1085 = vmatprep.mubr.f32.mxu1 %v155_v53 }
 0x15f   :  { %1086 = vmatmul.mubr.f32.gmra.mrb[32].mxu1 %v154_v54 }
 0x1f2   :  { %v932_v9 = vpop.f32.mrb[32].mxu0  ;;  %v2095_v10 = vpop.f32.mrb[0].mxu1 }
 0x1f3   :  { %v1009_v11 = vpop.f32.mrb[1].mxu1  ;;  %v934_v12 = vpop.f32.mrb[33].mxu0  ;;  %v933_v13 = vadd.f32 %v932_v9, %v709_v59 }
 0x1f5   :  { %v1091_v22 = vmax.f32 %v933_v13, 0.0 }
 0x1f6   :  { %v937_v14 = vpop.f32.mrb[34].mxu0  ;;  %v1012_v15 = vpop.f32.mrb[2].mxu1 }
 0x1f7   :  { %v938_v16 = vadd.f32 %v937_v14, %v714_v58  ;;  %v1014_v17 = vpop.f32.mrb[3].mxu1  ;;  %v939_v18 = vpop.f32.mrb[35].mxu0  ;;  %v1013_v24 = vadd.f32 %v1012_v15, %v789_v57 }
 0x1f9   :  { %v1092_v23 = vmax.f32 %v938_v16, 0.0  ;;  %v1107_v31 = vmax.f32 %v1013_v24, 0.0 }
 0x1fa   :  { %v942_v25 = vpop.f32.mrb[36].mxu0  ;;  %v1017_v26 = vpop.f32.mrb[4].mxu1 }
 0x1fb   :  { %v1414_v27 = vpack.c.bf16 %v1092_v23, %v1091_v22  ;;  %v1018_v28 = vadd.f32 %v1017_v26, %v794_v56  ;;  %v1019_v29 = vpop.f32.mrb[5].mxu1  ;;  %v944_v30 = vpop.f32.mrb[37].mxu0  ;;  %v943_v32 = vadd.f32 %v942_v25, %v719_v62 }
 0x1fd   :  { %v1108_v33 = vmax.f32 %v1018_v28, 0.0  ;;  %v1093_v42 = vmax.f32 %v943_v32, 0.0 }
 0x1fe   :  { %v947_v34 = vpop.f32.mrb[38].mxu0  ;;  %v1022_v35 = vpop.f32.mrb[6].mxu1 }
 0x1ff   :  { %v1412_v36 = vpack.c.bf16 %v1108_v33, %v1107_v31  ;;  %v948_v37 = vadd.f32 %v947_v34, %v724_v61  ;;  %v1024_v38 = vpop.f32.mrb[7].mxu1  ;;  %v949_v39 = vpop.f32.mrb[39].mxu0  ;;  %v1023_v44 = vadd.f32 %v1022_v35, %v799_v21 }
 0x200   :  { %v2105_v61 = vpop.permute.xlu1 %763  ;;  %v759_v21 = vpop.permute.xlu0 %758 }
 0x201   :  { %v1094_v43 = vmax.f32 %v948_v37, 0.0  ;;  %1413 = vmatprep.subr.bf16.mxu0 %v1412_v36  ;;  %v1109_v51 = vmax.f32 %v1023_v44, 0.0 }
 0x202   :  { %v952_v45 = vpop.f32.mrb[40].mxu0  ;;  %v1027_v46 = vpop.f32.mrb[8].mxu1  ;;  %1415 = vmatpush3.bf16.msra.mxu0 %v1414_v27 }
 0x203   :  { %v1418_v47 = vpack.c.bf16 %v1094_v43, %v1093_v42  ;;  %v1028_v48 = vadd.f32 %v1027_v46, %v804_v60  ;;  %v1029_v49 = vpop.f32.mrb[9].mxu1  ;;  %v954_v50 = vpop.f32.mrb[41].mxu0  ;;  %v953_v52 = vadd.f32 %v952_v45, %v729_v2 }
 0x204   :  { %v2111_v26 = vpop.permute.xlu1 %853  ;;  %v2113_v27 = vpop.permute.xlu0 %848 }
 0x205   :  { %v1110_v53 = vmax.f32 %v1028_v48, 0.0  ;;  %v1095_v62 = vmax.f32 %v953_v52, 0.0 }
 0x206   :  { %v957_v54 = vpop.f32.mrb[42].mxu0  ;;  %v1032_v55 = vpop.f32.mrb[10].mxu1 }
 0x207   :  { %v1416_v56 = vpack.c.bf16 %v1110_v53, %v1109_v51  ;;  %v958_v57 = vadd.f32 %v957_v54, %v734_v1  ;;  %v1034_v58 = vpop.f32.mrb[11].mxu1  ;;  %v959_v59 = vpop.f32.mrb[43].mxu0  ;;  %v1033_v11 = vadd.f32 %v1032_v55, %v2081_v0 }
 0x208   :  { %v774_v44 = vpop.permute.xlu1 %773  ;;  %v769_v45 = vpop.permute.xlu0 %768 }
 0x209   :  { %v1096_v9 = vmax.f32 %v958_v57, 0.0  ;;  %1417 = vmatprep.subr.bf16.mxu0 %v1416_v56  ;;  %v1111_v16 = vmax.f32 %v1033_v11, 0.0 }
 0x20a   :  { %v962_v60 = vpop.f32.mrb[44].mxu0  ;;  %v1037_v12 = vpop.f32.mrb[12].mxu1  ;;  %1419 = vmatpush3.bf16.msra.mxu0 %v1418_v47 }
 0x20b   :  { %v1422_v13 = vpack.c.bf16 %v1096_v9, %v1095_v62  ;;  %v1038_v2 = vadd.f32 %v1037_v12, %v2079_v63  ;;  %v1039_v14 = vpop.f32.mrb[13].mxu1  ;;  %v964_v15 = vpop.f32.mrb[45].mxu0  ;;  %v963_v1 = vadd.f32 %v962_v60, %v2089_v6 }
 0x20c   :  { %v859_v9 = vpop.permute.xlu0 %858 }
 0x20d   :  { %v1112_v17 = vmax.f32 %v1038_v2, 0.0  ;;  %v1097_v28 = vmax.f32 %v963_v1, 0.0 }
 0x20e   :  { %v967_v18 = vpop.f32.mrb[46].mxu0  ;;  %v1042_v22 = vpop.f32.mrb[14].mxu1 }
 0x20f   :  { %v1420_v23 = vpack.c.bf16 %v1112_v17, %v1111_v16  ;;  %v968_v24 = vadd.f32 %v967_v18, %v2087_v5  ;;  %v1044_v25 = vpop.f32.mrb[15].mxu1  ;;  %v969_v0 = vpop.f32.mrb[47].mxu0  ;;  %v1043_v63 = vadd.f32 %v1042_v22, %v2085_v4 }
 0x211   :  { %v1098_v29 = vmax.f32 %v968_v24, 0.0  ;;  %1421 = vmatprep.subr.bf16.mxu0 %v1420_v23  ;;  %v1113_v5 = vmax.f32 %v1043_v63, 0.0 }
 0x212   :  { %v972_v30 = vpop.f32.mrb[48].mxu0  ;;  %v1047_v31 = vpop.f32.mrb[16].mxu1  ;;  %1423 = vmatpush3.bf16.msra.mxu0 %v1422_v13 }
 0x213   :  { %v1426_v6 = vpack.c.bf16 %v1098_v29, %v1097_v28  ;;  %v1048_v32 = vadd.f32 %v1047_v31, %v2083_v3  ;;  %v1049_v33 = vpop.f32.mrb[17].mxu1  ;;  %v974_v34 = vpop.f32.mrb[49].mxu0  ;;  %v973_v35 = vadd.f32 %v972_v30, %v2099_v20 }
 0x215   :  { %v1114_v36 = vmax.f32 %v1048_v32, 0.0  ;;  %v1099_v46 = vmax.f32 %v973_v35, 0.0 }
 0x216   :  { %v977_v37 = vpop.f32.mrb[50].mxu0  ;;  %v1052_v38 = vpop.f32.mrb[18].mxu1 }
 0x217   :  { %v1424_v39 = vpack.c.bf16 %v1114_v36, %v1113_v5  ;;  %v978_v42 = vadd.f32 %v977_v37, %v2097_v19  ;;  %v1054_v43 = vpop.f32.mrb[19].mxu1  ;;  %v979_v4 = vpop.f32.mrb[51].mxu0  ;;  %v1053_v48 = vadd.f32 %v1052_v38, %v2093_v8 }
 0x218   :  { %v864_v8 = vpop.permute.xlu1 %863 }
 0x219   :  { %v1100_v47 = vmax.f32 %v978_v42, 0.0  ;;  %1425 = vmatprep.subr.bf16.mxu0 %v1424_v39  ;;  %v1115_v53 = vmax.f32 %v1053_v48, 0.0 }
 0x21a   :  { %v982_v3 = vpop.f32.mrb[52].mxu0  ;;  %v1057_v49 = vpop.f32.mrb[20].mxu1  ;;  %1427 = vmatpush3.bf16.msra.mxu0 %v1426_v6 }
 0x21b   :  { %v1430_v50 = vpack.c.bf16 %v1100_v47, %v1099_v46  ;;  %v1058_v20 = vadd.f32 %v1057_v49, %v2091_v7  ;;  %v1059_v51 = vpop.f32.mrb[21].mxu1  ;;  %v984_v52 = vpop.f32.mrb[53].mxu0  ;;  %v983_v54 = vadd.f32 %v982_v3, %v759_v21 }
 0x21c   :  { %v784_v0 = vpop.permute.xlu1 %783 }
 0x21d   :  { %v1116_v19 = vmax.f32 %v1058_v20, 0.0  ;;  %v1101_v11 = vmax.f32 %v983_v54, 0.0  ;;  %v1008_v28 = vadd.f32 %v2095_v10, %v784_v0 }
 0x21e   :  { %v987_v55 = vpop.f32.mrb[54].mxu0  ;;  %v1062_v56 = vpop.f32.mrb[22].mxu1 }
 0x21f   :  { %v1428_v57 = vpack.c.bf16 %v1116_v19, %v1115_v53  ;;  %v988_v58 = vadd.f32 %v987_v55, %v2105_v61  ;;  %v1064_v59 = vpop.f32.mrb[23].mxu1  ;;  %v989_v62 = vpop.f32.mrb[55].mxu0  ;;  %v1063_v12 = vadd.f32 %v1062_v56, %v2103_v41  ;;  %v1106_v35 = vmax.f32 %v1008_v28, 0.0 }
 0x220   :  { %v779_v41 = vpop.permute.xlu0 %778 }
 0x221   :  { %v1102_v60 = vmax.f32 %v988_v58, 0.0  ;;  %1429 = vmatprep.subr.bf16.mxu0 %v1428_v57  ;;  %v1117_v16 = vmax.f32 %v1063_v12, 0.0 }
 0x222   :  { %v992_v7 = vpop.f32.mrb[56].mxu0  ;;  %v1067_v13 = vpop.f32.mrb[24].mxu1  ;;  %1431 = vmatpush3.bf16.msra.mxu0 %v1430_v50 }
 0x223   :  { %v1434_v2 = vpack.c.bf16 %v1102_v60, %v1101_v11  ;;  %v1068_v21 = vadd.f32 %v1067_v13, %v2101_v40  ;;  %v1069_v14 = vpop.f32.mrb[25].mxu1  ;;  %v994_v15 = vpop.f32.mrb[57].mxu0  ;;  %v993_v1 = vadd.f32 %v992_v7, %v769_v45 }
 0x224   :  { %v1130_v20 = vpop.permute.xlu0 %1129 }
 0x225   :  { %v1118_v61 = vmax.f32 %v1068_v21, 0.0  ;;  %v1103_v29 = vmax.f32 %v993_v1, 0.0 }
 0x226   :  { %v997_v17 = vpop.f32.mrb[58].mxu0  ;;  %v1072_v18 = vpop.f32.mrb[26].mxu1 }
 0x227   :  { %v1432_v22 = vpack.c.bf16 %v1118_v61, %v1117_v16  ;;  %v998_v23 = vadd.f32 %v997_v17, %v774_v44  ;;  %v1074_v24 = vpop.f32.mrb[27].mxu1  ;;  %v999_v25 = vpop.f32.mrb[59].mxu0  ;;  %v1073_v30 = vadd.f32 %v1072_v18, %v2113_v27 }
 0x229   :  { %v1104_v63 = vmax.f32 %v998_v23, 0.0  ;;  %1433 = vmatprep.subr.bf16.mxu0 %v1432_v22  ;;  %v1119_v36 = vmax.f32 %v1073_v30, 0.0 }
 0x22a   :  { %v1002_v40 = vpop.f32.mrb[60].mxu0  ;;  %v1077_v31 = vpop.f32.mrb[28].mxu1  ;;  %1435 = vmatpush3.bf16.msra.mxu0 %v1434_v2 }
 0x22b   :  { %v1438_v6 = vpack.c.bf16 %v1104_v63, %v1103_v29  ;;  %v1003_v32 = vadd.f32 %v1002_v40, %v779_v41  ;;  %v1078_v33 = vadd.f32 %v1077_v31, %v2111_v26  ;;  %v1079_v34 = vpop.f32.mrb[29].mxu1  ;;  %v1004_v5 = vpop.f32.mrb[61].mxu0  ;;  %v188_v26 = vld [vmem:[%s2139_s5] sm:$0xff] }
 0x22d   :  { %v1105_v37 = vmax.f32 %v1003_v32, 0.0  ;;  %v1120_v38 = vmax.f32 %v1078_v33, 0.0 }
 0x22e   :  { %v1082_v39 = vpop.f32.mrb[30].mxu1 }
 0x22f   :  { %v1442_v10 = vpack.c.bf16 %v1106_v35, %v1105_v37  ;;  %v1436_v42 = vpack.c.bf16 %v1120_v38, %v1119_v36  ;;  %v1084_v43 = vpop.f32.mrb[31].mxu1  ;;  %v1083_v4 = vadd.f32 %v1082_v39, %v859_v9 }
 0x231   :  { %1437 = vmatprep.subr.bf16.mxu0 %v1436_v42  ;;  %v1121_v46 = vmax.f32 %v1083_v4, 0.0 }
 0x232   :  { %v1087_v27 = vpop.f32.mrb[32].mxu1  ;;  %1439 = vmatpush3.bf16.msra.mxu0 %v1438_v6 }
 0x233   :  { %v1088_v44 = vadd.f32 %v1087_v27, %v864_v8  ;;  %v1089_v45 = vpop.f32.mrb[33].mxu1 }
 0x235   :  { %v1122_v47 = vmax.f32 %v1088_v44, 0.0 }
 0x237   :  { %v1440_v48 = vpack.c.bf16 %v1122_v47, %v1121_v46 }
 0x239   :  { %1441 = vmatprep.subr.bf16.mxu0 %v1440_v48 }
 0x23a   :  { %1443 = vmatpush3.bf16.msra.mxu0 %v1442_v10 }
 0x23d   :  { %1197 = vmatmul.mubr.f32.vlgmr.msra.gmra.mrb[62].mxu0 %v188_v26 }
 0x310   :  { %v1311_v3 = vpop.f32.mrb[62].mxu0 }
 0x311   :  { %v1312_v49 = vpop.f32.mrb[63].mxu0 }
 0x312   :  { %v1313_v50 = vadd.f32 %v1312_v49, %v1311_v3 }
 0x314   :  { %v1199_v51 = vadd.f32 %v1313_v50, %v1130_v20 }
 0x316   :  { %v1202_v52 = vsub.f32 0.0, %v1199_v51 }
 0x318   :  { %v1203_v53 = vmul.f32 1.442695, %v1202_v52 }
 0x31a   :  { %1480 = vpow2.f32 %v1203_v53 }
 0x324   :  { %v1481_v54 = vpop.eup %1480 }
 0x325   :  { %v1205_v19 = vadd.f32 1.0, %v1481_v54 }
 0x327   :  { %1482 = vrcp.f32 %v1205_v19 }
 0x331   :  { %v1483_v55 = vpop.eup %1482 }
 0x332   :  { %1208 = vst [vmem:[%s2140_s7] sm:$0xff] %v1483_v55 }

</bundles_post_ra>
